<compile_context>
chip_gen: v5e
topology: v5e:2x2
jax: 0.10.0
libtpu: 0.0.40
codegen_flags: <defaults>
</compile_context>

<pallas_src>
import math

import jax
import jax.numpy as jnp
from jax.experimental import pallas as pl
from jax.experimental.pallas import tpu as pltpu

_LANE = 128
_TILE_CAP = 1024                       # per-axis tile cap for the big n x n kernels
_COS_TILE_CAP = 512                    # row-tile cap for the batched cosine kernel
_H_RESIDENT_BYTES = 4 * 1024 * 1024    # keep resident bf16 h under ~4 MiB
_VMEM_LIMIT = 32 * 1024 * 1024         # safe on v5e/v6e (128 MiB) and v7x (64 MiB)


def _round_up(x, m):
    return ((x + m - 1) // m) * m


def _pick_tile(n, cap=_TILE_CAP):
    """Largest multiple-of-128 divisor of n that is <= cap (n is a 128-multiple)."""
    t = min(cap, n)
    while n % t:
        t -= _LANE
    return t


# ----------------------------- Pallas kernels ------------------------------

def _self_sim_kernel(x_ref, xt_ref, o_ref):
    """o = 0.99999 * (row-normalized x tile) @ (col-normalized x^T).

    RHS arrives pre-transposed (d, Lp) so the contraction dim is leading and no
    in-kernel XLU transpose is needed.  eps=1e-12 guards zero rows (the torch
    reference would NaN there).  Kept f32: bf16 rounding could push |cos| > 1
    and NaN the downstream arccos.
    """
    x = x_ref[0]      # (tr, d)
    xt = xt_ref[0]    # (d, Lp)
    sc = jax.lax.rsqrt(jnp.sum(x * x, axis=1, keepdims=True) + 1e-12)    # (tr, 1)
    sr = jax.lax.rsqrt(jnp.sum(xt * xt, axis=0, keepdims=True) + 1e-12)  # (1, Lp)
    o_ref[0] = jnp.dot(x * sc, xt * sr,
                       preferred_element_type=jnp.float32) * 0.99999


def batched_self_cosine(feats):
    """All three modalities' (L, L) cosine matrices in ONE tiled pallas_call.

    Rows are zero-padded to a 128-multiple (lane-dense output, (8,128)-aligned);
    padded rows give exact zeros (0 * rsqrt(eps) == 0) and are sliced away.
    """
    L, d = feats[0].shape
    Lp = _round_up(max(L, _LANE), _LANE)
    xs = jnp.stack([jnp.pad(f, ((0, Lp - L), (0, 0))) for f in feats])  # (3, Lp, d)
    xts = jnp.transpose(xs, (0, 2, 1))                                  # (3, d, Lp)
    tr = _pick_tile(Lp, cap=_COS_TILE_CAP)

    out = pl.pallas_call(
        _self_sim_kernel,
        out_shape=jax.ShapeDtypeStruct((3, Lp, Lp), jnp.float32),
        grid=(3, Lp // tr),
        in_specs=[pl.BlockSpec((1, tr, d), lambda m, r: (m, r, 0)),
                  pl.BlockSpec((1, d, Lp), lambda m, r: (m, 0, 0))],  # resident per m
        out_specs=pl.BlockSpec((1, tr, Lp), lambda m, r: (m, r, 0)),
        compiler_params=pltpu.CompilerParams(
            dimension_semantics=("arbitrary", "parallel"),
            vmem_limit_bytes=_VMEM_LIMIT),
    )(xs, xts)
    return out[:, :L, :L]   # (3, L, L)


def _deg_rsqrt_kernel(a_ref, o_ref):
    """Tiled row-sum reduction -> d, then rsqrt(where(d==0, 1e-12, d)) epilogue."""
    k = pl.program_id(1)

    @pl.when(k == 0)
    def _():
        o_ref[...] = jnp.zeros_like(o_ref)

    o_ref[...] += jnp.sum(a_ref[...], axis=1, keepdims=True)

    @pl.when(k == pl.num_programs(1) - 1)
    def _():
        d = o_ref[...]
        # matches torch: d==0 -> 1e-12, then pow(-0.5); zeros in A keep rows zero.
        o_ref[...] = jax.lax.rsqrt(jnp.where(d == 0.0, 1e-12, d))


def _sym_scale_kernel(a_ref, sc_ref, sr_ref, o_ref, obf_ref):
    """Pure-VPU D^{-1/2} A D^{-1/2}; also emits the bf16 copy used by adj@h
    (fused cast — the f32 tile is already in vregs)."""
    scaled = (sc_ref[...] * a_ref[...]) * sr_ref[...]
    o_ref[...] = scaled
    obf_ref[...] = scaled.astype(jnp.bfloat16)


def sym_norm(adj):
    """adj_la = D^{-1/2} A D^{-1/2}; returns (f32 adj_la, bf16 adj_la)."""
    n = adj.shape[0]                      # padded, multiple of 128
    tm = _pick_tile(n)
    tk = _pick_tile(n)

    s = pl.pallas_call(
        _deg_rsqrt_kernel,
        out_shape=jax.ShapeDtypeStruct((n, 1), jnp.float32),
        grid=(n // tm, n // tk),
        in_specs=[pl.BlockSpec((tm, tk), lambda i, k: (i, k))],
        out_specs=pl.BlockSpec((tm, 1), lambda i, k: (i, 0)),
        compiler_params=pltpu.CompilerParams(
            dimension_semantics=("parallel", "arbitrary"),
            vmem_limit_bytes=_VMEM_LIMIT),
    )(adj)

    s_row = s.reshape(1, n)               # (1, N) transpose built in the wrapper

    adj_la, adj_bf16 = pl.pallas_call(
        _sym_scale_kernel,
        out_shape=(jax.ShapeDtypeStruct((n, n), jnp.float32),
                   jax.ShapeDtypeStruct((n, n), jnp.bfloat16)),
        grid=(n // tm, n // tk),
        in_specs=[pl.BlockSpec((tm, tk), lambda i, j: (i, j)),
                  pl.BlockSpec((tm, 1), lambda i, j: (i, 0)),
                  pl.BlockSpec((1, tk), lambda i, j: (0, j))],
        out_specs=[pl.BlockSpec((tm, tk), lambda i, j: (i, j)),
                   pl.BlockSpec((tm, tk), lambda i, j: (i, j))],
        compiler_params=pltpu.CompilerParams(
            dimension_semantics=("parallel", "parallel"),
            vmem_limit_bytes=_VMEM_LIMIT),
    )(adj, s, s_row)
    return adj_la, adj_bf16


def _linear_relu_kernel(x_ref, w_ref, b_ref, o_ref):
    o_ref[...] = jnp.maximum(
        jnp.dot(x_ref[...], w_ref[...], preferred_element_type=jnp.float32)
        + b_ref[...], 0.0)


def linear_relu(x, w, b):
    """fcs[0] + ReLU.  x and w stream as bf16 (f32 accumulation)."""
    n, d = x.shape
    h = w.shape[1]
    tm = _pick_tile(n)
    return pl.pallas_call(
        _linear_relu_kernel,
        out_shape=jax.ShapeDtypeStruct((n, h), jnp.float32),
        grid=(n // tm,),
        in_specs=[pl.BlockSpec((tm, d), lambda i: (i, 0)),
                  pl.BlockSpec((d, h), lambda i: (0, 0)),
                  pl.BlockSpec((1, h), lambda i: (0, 0))],
        out_specs=pl.BlockSpec((tm, h), lambda i: (i, 0)),
        compiler_params=pltpu.CompilerParams(
            dimension_semantics=("parallel",)),
    )(x.astype(jnp.bfloat16), w.astype(jnp.bfloat16), b)


def _make_gcnii_layer_kernel(alpha, theta, tk, h_resident):
    def kernel(adj_ref, h_ref, h0_ref, w_ref, o_ref, acc_ref):
        k = pl.program_id(1)

        @pl.when(k == 0)
        def _():
            acc_ref[...] = jnp.zeros_like(acc_ref)

        if h_resident:
            # h is resident in VMEM for the whole layer (constant index_map);
            # slice the (tk, hdim) chunk for this reduction step.
            hk = h_ref[pl.ds(pl.multiple_of(k * tk, _LANE), tk), :]
        else:
            hk = h_ref[...]
        # adj streamed as bf16, h pre-cast to bf16 in the wrapper; f32 accumulate.
        acc_ref[...] += jnp.dot(adj_ref[...], hk,
                                preferred_element_type=jnp.float32)

        @pl.when(k == pl.num_programs(1) - 1)
        def _():
            support = (1.0 - alpha) * acc_ref[...] + alpha * h0_ref[...]
            out = (theta * jnp.dot(support.astype(jnp.bfloat16), w_ref[...],
                                   preferred_element_type=jnp.float32)
                   + (1.0 - theta) * support)
            o_ref[...] = jnp.maximum(out, 0.0)      # act_fn = ReLU
    return kernel


def gcnii_layer(adj_bf16, h_bf16, h0, w_bf16, alpha, theta):
    """One GCNII conv layer: (rows x K) grid, f32 accumulator, fused epilogue.
    h (bf16) is kept resident in VMEM when small enough (no per-row-tile
    re-streaming from HBM)."""
    n = adj_bf16.shape[0]
    hdim = h_bf16.shape[1]
    tm = _pick_tile(n)
    tk = _pick_tile(n)
    h_resident = (n * hdim * 2) <= _H_RESIDENT_BYTES
    if h_resident:
        h_spec = pl.BlockSpec((n, hdim), lambda i, k: (0, 0))     # loaded once
    else:
        h_spec = pl.BlockSpec((tk, hdim), lambda i, k: (k, 0))    # streamed

    return pl.pallas_call(
        _make_gcnii_layer_kernel(float(alpha), float(theta), tk, h_resident),
        out_shape=jax.ShapeDtypeStruct((n, hdim), jnp.float32),
        grid=(n // tm, n // tk),
        in_specs=[pl.BlockSpec((tm, tk), lambda i, k: (i, k)),      # adj (bf16)
                  h_spec,                                           # h   (bf16)
                  pl.BlockSpec((tm, hdim), lambda i, k: (i, 0)),    # h0  (f32)
                  pl.BlockSpec((hdim, hdim), lambda i, k: (0, 0))], # W   (bf16)
        out_specs=pl.BlockSpec((tm, hdim), lambda i, k: (i, 0)),
        scratch_shapes=[pltpu.VMEM((tm, hdim), jnp.float32)],
        compiler_params=pltpu.CompilerParams(
            dimension_semantics=("parallel", "arbitrary"),
            vmem_limit_bytes=_VMEM_LIMIT),
    )(adj_bf16, h_bf16, h0, w_bf16)


# --------------------------- glue (plain JAX) ------------------------------

def _adj_space_synthetic(length):
    # TODO(synk): adj_space() is undefined in the reference; use |i-j| distance.
    idx = jnp.arange(length, dtype=jnp.float32)
    return jnp.abs(idx[:, None] - idx[None, :])


def _topk_keep(mat, k=20):
    """Zero all but the k largest per column, then per row (torch semantics;
    >= threshold keeps ties — slight deviation).  n <= k -> identity."""
    n = mat.shape[0]
    if n <= k:
        return mat
    col_t = jnp.sort(mat, axis=0)[n - k, :]
    mat = jnp.where(mat >= col_t[None, :], mat, 0.0)
    row_t = jnp.sort(mat, axis=1)[:, n - k]
    mat = jnp.where(mat >= row_t[:, None], mat, 0.0)
    return mat


def _row_cosine(a, b):
    """Row-wise cosine similarity (the diagonal of the cross cos-sim matrix),
    computed directly in O(L*d) over the full length."""
    na = a * jax.lax.rsqrt(jnp.sum(a * a, axis=1, keepdims=True) + 1e-12)
    nb = b * jax.lax.rsqrt(jnp.sum(b * b, axis=1, keepdims=True) + 1e-12)
    return jnp.sum(na * nb, axis=1) * 0.99999


def create_big_adj(t, v, p, dia_len, vid_index):
    """Returns (adj_la_f32, adj_la_bf16), symmetrically normalized and
    zero-padded to a 128-multiple (padded rows/cols are zero and do not affect
    real rows)."""
    del vid_index  # only used by the undefined adj_space() in the reference
    modal_feats = [t, v, p]
    modal_num = 3
    all_length = t.shape[0]
    big_n = modal_num * all_length

    # All same-modal cosine matrices in one batched Pallas call.
    cos_full = batched_self_cosine(modal_feats)                  # (3, L, L)
    # TODO(synk): arccos epilogue kept in XLA (Mosaic acos support uncertain).
    sim_full = 1.0 - jnp.arccos(cos_full) / math.pi

    # Cross-modal values are row-wise; dialogue structure is irrelevant.
    cross_pairs = [(0, 1), (0, 2), (1, 2)]
    cross_sim = {(m, n): 1.0 - jnp.arccos(_row_cosine(modal_feats[m],
                                                      modal_feats[n])) / math.pi
                 for (m, n) in cross_pairs}

    # Per-dialogue log-distance weighting + top-k sparsification (same-modal).
    same_blocks = [[] for _ in range(modal_num)]
    start = 0
    for li in dia_len:
        log_dist = jnp.log(_adj_space_synthetic(li) + 1.0) + 0.0001
        for m in range(modal_num):
            sim = sim_full[m, start:start + li, start:start + li]
            same_blocks[m].append(_topk_keep(sim / log_dist, k=20))
        start += li

    # Assemble the 3L x 3L adjacency with block constructors.
    same = [jax.scipy.linalg.block_diag(*blocks) for blocks in same_blocks]
    cross = {pr: jnp.diag(vals) for pr, vals in cross_sim.items()}

    rows = []
    for m in range(modal_num):
        row = []
        for n in range(modal_num):
            if m == n:
                row.append(same[m])
            else:
                key = (m, n) if (m, n) in cross else (n, m)   # cosine is symmetric
                row.append(cross[key])
        rows.append(row)
    adj = jnp.block(rows).astype(jnp.float32)

    # Pad to a 128-multiple so all adjacency-sized kernels are lane-dense.
    n_pad = _round_up(max(big_n, _LANE), _LANE)
    adj = jnp.pad(adj, ((0, n_pad - big_n), (0, n_pad - big_n)))

    return sym_norm(adj)          # Pallas: tiled D^{-1/2} A D^{-1/2} (+bf16 copy)


def gcnii_forward(x, adj_bf16, params, lamda, alpha, use_residue):
    h = linear_relu(x, params["w_in"], params["b_in"])       # fcs[0] + ReLU
    h0 = h
    for i, w in enumerate(params["w_convs"]):
        theta = math.log(lamda / (i + 1) + 1.0)
        # h cast once per layer in XLA (n*hdim bytes, negligible vs n^2 adj);
        # the kernel then keeps it resident in VMEM.
        h = gcnii_layer(adj_bf16, h.astype(jnp.bfloat16), h0,
                        w.astype(jnp.bfloat16), alpha, theta)
    if use_residue:
        h = jnp.concatenate([x, h], axis=-1)
    return h


def sm_gcn_forward(t, v, p, dia_len, vid_index, params, *, lamda, alpha,
                   use_residue):
    all_length = t.shape[0]
    big_n = 3 * all_length

    adj_la_pad, adj_bf16_pad = create_big_adj(t, v, p, dia_len, vid_index)
    n_pad = adj_la_pad.shape[0]
    adj_la = adj_la_pad[:big_n, :big_n]                        # module output (f32)

    features = jnp.concatenate([t, v, p], axis=0)
    feats_pad = jnp.pad(features, ((0, n_pad - big_n), (0, 0)))

    fe_pad = gcnii_forward(feats_pad, adj_bf16_pad, params, lamda, alpha,
                           use_residue)
    features_e = fe_pad[:big_n]

    ft = features_e[:all_length]
    fv = features_e[all_length:all_length * 2]
    fp = features_e[all_length * 2:all_length * 3]
    neighbor_emb = jnp.concatenate([ft, fv, fp], axis=-1)
    # return_feature=True path of SM_GCN.forward
    return features_e, adj_la, neighbor_emb, ft, fv, fp


def init_params(key, n_dim, nhidden, nlayers):
    keys = jax.random.split(key, nlayers + 1)
    # weights stored already transposed to (in, out) so kernels do x @ W + b
    w_in = jax.random.normal(keys[0], (n_dim, nhidden), jnp.float32) / math.sqrt(n_dim)
    b_in = jnp.zeros((1, nhidden), jnp.float32)
    w_convs = [jax.random.normal(keys[i + 1], (nhidden, nhidden), jnp.float32)
               / math.sqrt(nhidden) for i in range(nlayers)]
    return {"w_in": w_in, "b_in": b_in, "w_convs": w_convs}


if __name__ == "__main__":
    # small but module-consistent shapes
    n_dim, nhidden, nlayers = 128, 128, 2
    lamda, alpha = 0.5, 0.1
    dia_len = [4, 4]                       # two dialogues of 4 utterances
    total_len = sum(dia_len)               # nodes per modality
    vid_index = list(range(len(dia_len)))  # only its length matters here

    key = jax.random.PRNGKey(0)
    kt, kv, kp, kparam = jax.random.split(key, 4)
    t = jax.random.normal(kt, (total_len, n_dim), jnp.float32)
    v = jax.random.normal(kv, (total_len, n_dim), jnp.float32)
    p = jax.random.normal(kp, (total_len, n_dim), jnp.float32)

    params = init_params(kparam, n_dim, nhidden, nlayers)

    outs = sm_gcn_forward(t, v, p, dia_len, vid_index, params,
                          lamda=lamda, alpha=alpha, use_residue=True)
    features_e, adj_la, neighbor_emb, ft, fv, fp = outs
    jax.block_until_ready((features_e, adj_la, neighbor_emb, ft, fv, fp))

    assert features_e.shape == (3 * total_len, n_dim + nhidden)
    assert adj_la.shape == (3 * total_len, 3 * total_len)
    assert neighbor_emb.shape == (total_len, 3 * (n_dim + nhidden))
    assert bool(jnp.all(jnp.isfinite(features_e)))
    assert bool(jnp.all(jnp.isfinite(adj_la)))
    print("KERNEL_OK")
</pallas_src>

<mosaic_0001>
module attributes {stable_mosaic.version = 11 : i64} {
  func.func @_self_sim_kernel(%arg0: i32, %arg1: i32, %arg2: memref<1x128x128xf32, #tpu.memory_space<vmem>>, %arg3: memref<1x128x128xf32, #tpu.memory_space<vmem>>, %arg4: memref<1x128x128xf32, #tpu.memory_space<vmem>>) attributes {dimension_semantics = [#tpu.dimension_semantics<arbitrary>, #tpu.dimension_semantics<parallel>], iteration_bounds = array<i64: 3, 1>, scalar_prefetch = 0 : i64, scratch_operands = 0 : i64, tpu.core_type = #tpu.core_type<tc>, window_params = [{transform_indices = @transform_0, window_bounds = array<i64: 1, 128, 128>}, {transform_indices = @transform_1, window_bounds = array<i64: 1, 128, 128>}, {transform_indices = @transform_2, window_bounds = array<i64: 1, 128, 128>}]} {
    %c0 = arith.constant 0 : index
    %c0_0 = arith.constant 0 : index
    %c0_1 = arith.constant 0 : index
    %0 = vector.load %arg2[%c0, %c0_0, %c0_1] : memref<1x128x128xf32, #tpu.memory_space<vmem>>, vector<1x128x128xf32>
    %1 = vector.shape_cast %0 : vector<1x128x128xf32> to vector<128x128xf32>
    %c0_2 = arith.constant 0 : index
    %c0_3 = arith.constant 0 : index
    %c0_4 = arith.constant 0 : index
    %2 = vector.load %arg3[%c0_2, %c0_3, %c0_4] : memref<1x128x128xf32, #tpu.memory_space<vmem>>, vector<1x128x128xf32>
    %3 = vector.shape_cast %2 : vector<1x128x128xf32> to vector<128x128xf32>
    %4 = arith.mulf %1, %1 : vector<128x128xf32>
    %cst = arith.constant dense<0.000000e+00> : vector<128xf32>
    %5 = vector.multi_reduction <add>, %4, %cst [1] : vector<128x128xf32> to vector<128xf32>
    %6 = vector.shape_cast %5 : vector<128xf32> to vector<128x1xf32>
    %cst_5 = arith.constant 9.99999996E-13 : f32
    %7 = vector.broadcast %cst_5 : f32 to vector<128x1xf32>
    %8 = arith.addf %6, %7 : vector<128x1xf32>
    %9 = math.rsqrt %8 : vector<128x1xf32>
    %10 = arith.mulf %3, %3 : vector<128x128xf32>
    %cst_6 = arith.constant dense<0.000000e+00> : vector<128xf32>
    %11 = vector.multi_reduction <add>, %10, %cst_6 [0] : vector<128x128xf32> to vector<128xf32>
    %12 = vector.shape_cast %11 : vector<128xf32> to vector<1x128xf32>
    %cst_7 = arith.constant 9.99999996E-13 : f32
    %13 = vector.broadcast %cst_7 : f32 to vector<1x128xf32>
    %14 = arith.addf %12, %13 : vector<1x128xf32>
    %15 = math.rsqrt %14 : vector<1x128xf32>
    %16 = vector.broadcast %9 : vector<128x1xf32> to vector<128x128xf32>
    %17 = arith.mulf %1, %16 : vector<128x128xf32>
    %18 = vector.broadcast %15 : vector<1x128xf32> to vector<128x128xf32>
    %19 = arith.mulf %3, %18 : vector<128x128xf32>
    %cst_8 = arith.constant dense<0.000000e+00> : vector<128x128xf32>
    %20 = tpu.matmul %17, %19, %cst_8 {dimension_numbers = #tpu.dot_dimension_numbers<[1], [0], [0], [1], [0, 0, 1, 1], [], []>} : vector<128x128xf32>, vector<128x128xf32>, vector<128x128xf32> -> vector<128x128xf32>
    %cst_9 = arith.constant 0.999989986 : f32
    %21 = vector.broadcast %cst_9 : f32 to vector<128x128xf32>
    %22 = arith.mulf %20, %21 : vector<128x128xf32>
    %c0_10 = arith.constant 0 : index
    %c0_11 = arith.constant 0 : index
    %c0_12 = arith.constant 0 : index
    %23 = vector.load %arg4[%c0_10, %c0_11, %c0_12] : memref<1x128x128xf32, #tpu.memory_space<vmem>>, vector<1x128x128xf32>
    %24 = vector.shape_cast %23 : vector<1x128x128xf32> to vector<128x128xf32>
    %25 = vector.shape_cast %22 : vector<128x128xf32> to vector<1x128x128xf32>
    tpu.vector_store %arg4[%c0_10, %c0_11, %c0_12], %25 {strides = array<i32>} : memref<1x128x128xf32, #tpu.memory_space<vmem>>, vector<1x128x128xf32>,
    return
  }
  func.func @transform_0(%arg0: i32, %arg1: i32) -> (i32, i32, i32) {
    %c0_i32 = arith.constant 0 : i32
    %c0_i32_0 = arith.constant 0 : i32
    return %arg0, %arg1, %c0_i32 : i32, i32, i32
  }
  func.func @transform_1(%arg0: i32, %arg1: i32) -> (i32, i32, i32) {
    %c0_i32 = arith.constant 0 : i32
    %c0_i32_0 = arith.constant 0 : i32
    %c0_i32_1 = arith.constant 0 : i32
    return %arg0, %c0_i32, %c0_i32_0 : i32, i32, i32
  }
  func.func @transform_2(%arg0: i32, %arg1: i32) -> (i32, i32, i32) {
    %c0_i32 = arith.constant 0 : i32
    %c0_i32_0 = arith.constant 0 : i32
    return %arg0, %arg1, %c0_i32 : i32, i32, i32
  }
}

</mosaic_0001>

<bundles_post_ra>
// kernel: tpu_custom_call.1
= control target key start
LH: loop header
LB: loop body
LE: loop exit
PB: predicated region body
PF: predicated region fallthrough
CT: control target
= control target key end

     0   :  { %7 = vsyncpa [#allocation3], 0  ;;  %s1687_s0 = inlined_call_operand.hbm [shape: f32[3,128,128], index: 0, kind: input, shape index: {}]   ;;  %s1688_s1 = inlined_call_operand.hbm [shape: f32[3,128,128], index: 1, kind: input, shape index: {}]   ;;  %s1689_s2 = inlined_call_operand.hbm [shape: f32[3,128,128], index: 2, kind: output, shape index: {}]  }
   0x1   :  { %9 = vsyncpa [#allocation3 + $0x1], 0 }
   0x2   :  { %10 = vsyncpa [#allocation6], 0 }
   0x3   :  { %12 = vsyncpa [#allocation6 + $0x1], 0 }
   0x4   :  { %13 = vsyncpa [#allocation4], 0 }
   0x5   :  { %15 = vsyncpa [#allocation4 + $0x1], 0  ;;  %s1129_s9 = smov 0   ;;  %s1131_s10 = smov 0  }
   0x6   :  { %s1133_s11 = smov 0   ;;  %s1135_s12 = smov 0  }
   0x7   :  { %s1137_s13 = smov 0   ;;  %s1139_s14 = smov 0  }
   0x8 LB: > { %s787_s15 = sadd.s32 4294967295, %s1108_s14   ;;  %s788_s16 = sadd.s32 4294967294, %s1108_s14   ;;  %s1108_s14 = sphi %s1139_s14, %s21_s14   ;;  %s1104_s13 = sphi %s1137_s13, %s1707_s13   ;;  %s1100_s12 = sphi %s1135_s12, %s1706_s12   ;;  %s1096_s11 = sphi %s1133_s11, %s1705_s11   ;;  %s1092_s10 = sphi %s1131_s10, %s1704_s10   ;;  %s1088_s9 = sphi %s1129_s9, %s1703_s9  }
   0x9   : > { %s33_s17 = sadd.s32 1, %s1104_s13  ;;  %s42_s18 = sadd.s32 1, %s1096_s11 }
   0xa   : > { %p35_p0 = scmp.ge.s32.totalorder %s33_s17, 3  ;;  %p49_p1 = scmp.ne.s32.totalorder %s1096_s11, %s1092_s10 }
   0xb   : > { %p50_p2 = scmp.eq.s32.totalorder %s1108_s14, 0  ;;  %p55_p3 = scmp.ne.s32.totalorder %s1092_s10, %s1088_s9 }
   0xc   : > { %s1709_s17 = smov (%p35_p0, %s33_s17), 0  ;;  %p56_p5 = scmp.eq.s32.totalorder %s787_s15, 0 }
   0xd   : > { %p1170_p4 = por %p50_p2, %p49_p1  ;;  %s37_s20 = ssub.s32 %s1104_s13, %s1709_s17 }
   0xe   : > { %p107_p6 = scmp.eq.s32.totalorder %s787_s15, 2  ;;  %p40_p7 = scmp.eq.s32.totalorder %s37_s20, 0 }
   0xf   : > { %p1176_p8 = por %p56_p5, %p55_p3  ;;  %p113_p10 = scmp.eq.s32.totalorder %s788_s16, 2 }
  0x10   : > { %p1180_p9 = por %p107_p6, %p49_p1  ;;  %p874_p12 = scmp.lt.s32.totalorder %s1108_s14, 3 }
  0x11   : > { %s1185_s23 = scalar_select %p40_p7, %s1096_s11, %s42_s18  }
  0x12   : > { %p1187_p11 = por %p113_p10, %p55_p3  ;;  %s1193_s25 = sand.u32 1, %s1096_s11  }
  0x13   : > { %s791_s26 = sshll.u32 %s1193_s25, 7  ;;  %s806_s27 = sshll.u32 %s1104_s13, 7 }
  0x14   : > { %s144_s30 = scalar_lea.hbm %s1687_s0, %s806_s27  ;;  %s137_s3 = scalar_lea.vmem [#allocation2], %s791_s26 }
  0x15   : > { %s147_s4 = sshll.u32 %s137_s3, 4  ;;  %s145_s5 = sshll.u32 %s144_s30, 4  ;;  %s148_s4 = int_to_ptr.vmem [resolvable:$true] %s147_s4  ;;  %s146_s5 = int_to_ptr.hbm [resolvable:$true] %s145_s5 }
  0x16   : > { %p1202_p13 = pnand %p874_p12, %p1170_p4  ;;  %p797_p0 = scmp.ge.s32.totalorder %s1108_s14, 1 }
  0x17   : > { %s134_s7 = scalar_lea.sflag [#allocation3], %s1193_s25  ;;  %s1110_s8 = smov 128  }
  0x18   : > { %s1111_s15 = smov 8   ;;  %p177_p1 = scmp.lt.s32.totalorder %s1108_s14, 4 }
  0x19   : > { %866 = dma.hbm_to_vmem [thread:$0]  (!%p1202_p13), %s146_s5, 2048, %s148_s4, %s134_s7, %s1110_s8, %s1110_s8, %s1111_s15  }
  0x1a   : > { %s166_s20 = scalar_lea.hbm %s1688_s1, %s806_s27  ;;  %p178_p2 = pnand %p797_p0, %p177_p1 }
  0x1b   : > { %s167_s28 = sshll.u32 %s166_s20, 4  ;;  %s161_s19 = scalar_lea.vmem [#allocation5], %s791_s26  ;;  %s168_s28 = int_to_ptr.hbm [resolvable:$true] %s167_s28 }
  0x1c   : > { %s169_s29 = sshll.u32 %s161_s19, 4  ;;  %s158_s30 = scalar_lea.sflag [#allocation6], %s1193_s25  ;;  %s170_s29 = int_to_ptr.vmem [resolvable:$true] %s169_s29 }
  0x1d   : > { %869 = dma.hbm_to_vmem [thread:$0]  (!%p1202_p13), %s168_s28, 2048, %s170_s29, %s158_s30, %s1110_s8, %s1110_s8, %s1111_s15  }
  0x1e   : > { %181 = sbr.rel (%p178_p2) target bundleno = 352 (0x160), region = 28  ;;  %s1218_s3 = sand.u32 (!%p178_p2), 1, %s1092_s10  }
  0x1f   : > { %s1221_s4 = sshll.u32 (!%p178_p2), %s1218_s3, 7  ;;  %s184_s27 = scalar_lea.sflag (!%p178_p2), [#allocation3], %s1218_s3 }
  0x20   : > { %s1225_s5 = scalar_lea.vmem (!%p178_p2), [#allocation2], %s1221_s4 }
  0x23   : > { %1075 = dma.done.wait (%p1176_p8), %s184_s27, 2048  }
  0x24   : > { %1077 = vsyncadd (%p1176_p8), %s184_s27, 4294965248  ;;  %s194_s25 = scalar_lea.sflag [#allocation6], %s1218_s3  ;;  %s1233_s26 = scalar_lea.vmem [#allocation5], %s1221_s4 }
  0x25   : > { %1079 = dma.done.wait (%p1176_p8), %s194_s25, 2048  }
  0x26   : > { %1081 = vsyncadd (%p1176_p8), %s194_s25, 4294965248  ;;  %v1240_v0 = vld [vmem:[%s1225_s5 + $0x48] sm:$0xff]  ;;  %v1243_v1 = vld [vmem:[%s1225_s5 + $0x40] sm:$0xff]  ;;  %s1631_s21 = scalar_lea.vmem [#allocation7], %s1221_s4  ;;  %s808_s6 = sshll.u32 %s1100_s12, 7 }
  0x27   : > { %v1246_v2 = vld [vmem:[%s1225_s5] sm:$0xff]  ;;  %v267_v3 = vmul.f32 %v1240_v0, %v1240_v0  ;;  %v266_v4 = vmul.f32 %v1243_v1, %v1243_v1  ;;  %v1255_v6 = vld [vmem:[%s1225_s5 + $0x68] sm:$0xff]  ;;  %v1276_v14 = vld [vmem:[%s1233_s26 + $0x10] sm:$0xff]  ;;  %s673_s15 = scalar_lea.hbm %s1689_s2, %s808_s6  ;;  %s674_s16 = sshll.u32 %s1631_s21, 4  ;;  %s675_s16 = int_to_ptr.vmem [resolvable:$true] %s674_s16 }
  0x28   : > { %v258_v5 = vmul.f32 %v1246_v2, %v1246_v2  ;;  %v1258_v7 = vld [vmem:[%s1225_s5 + $0x60] sm:$0xff]  ;;  %v271_v9 = vmul.f32 %v1255_v6, %v1255_v6  ;;  %v1273_v13 = vld [vmem:[%s1233_s26 + $0x8] sm:$0xff]  ;;  %v1279_v15 = vld [vmem:[%s1225_s5 + $0x50] sm:$0xff]  ;;  %v484_v20 = vmul.f32 %v1276_v14, %v1276_v14  ;;  %s676_s18 = sshll.u32 %s673_s15, 4  ;;  %s660_s12 = scalar_lea.sflag [#allocation4], %s1218_s3  ;;  %s677_s18 = int_to_ptr.hbm [resolvable:$true] %s676_s18 }
  0x29   : > { %292 = vadd.xlane.f32.xlu2 %v267_v3  ;;  %290 = vadd.xlane.f32.xlu0 %v266_v4  ;;  %v1261_v8 = vld [vmem:[%s1225_s5 + $0x20] sm:$0xff]  ;;  %v270_v10 = vmul.f32 %v1258_v7, %v1258_v7  ;;  %v1282_v16 = vld [vmem:[%s1225_s5 + $0x8] sm:$0xff]  ;;  %v1285_v17 = vld [vmem:[%s1233_s26 + $0x18] sm:$0xff]  ;;  %v483_v19 = vmul.f32 %v1273_v13, %v1273_v13  ;;  %v268_v25 = vmul.f32 %v1279_v15, %v1279_v15  ;;  %s1036_s20 = sshra.s32 %s677_s18, 4  ;;  %s1042_s30 = scalar_lea.hbm %s1689_s2, 384  ;;  %s1037_s20 = int_to_ptr.hbm [resolvable:$true] %s1036_s20 }
  0x2a   : > { %274 = vadd.xlane.f32.xlu1 %v258_v5  ;;  %v262_v11 = vmul.f32 %v1261_v8, %v1261_v8  ;;  %v1270_v12 = vld [vmem:[%s1233_s26] sm:$0xff]  ;;  %v1294_v21 = vld [vmem:[%s1225_s5 + $0x28] sm:$0xff]  ;;  %v485_v23 = vmul.f32 %v1285_v17, %v1285_v17  ;;  %v259_v26 = vmul.f32 %v1282_v16, %v1282_v16  ;;  %v1313_v31 = vld [vmem:[%s1233_s26 + $0x30] sm:$0xff]  ;;  %s1038_s28 = scalar_lea.hbm %s1037_s20, 128  ;;  %p1043_p6 = scmp.lt.s32.totalorder %s1037_s20, %s1689_s2 }
  0x2b   : > { %v482_v18 = vmul.f32 %v1270_v12, %v1270_v12  ;;  %v1297_v22 = vld [vmem:[%s1233_s26 + $0x20] sm:$0xff]  ;;  %v1306_v27 = vld [vmem:[%s1233_s26 + $0x28] sm:$0xff]  ;;  %v263_v28 = vmul.f32 %v1294_v21, %v1294_v21  ;;  %v1318_v34 = vld [vmem:[%s1233_s26 + $0x38] sm:$0xff]  ;;  %v488_v37 = vmul.f32 %v1313_v31, %v1313_v31  ;;  %p1039_p3 = scmp.ne.s32.totalorder %s1037_s20, %s1038_s28  ;;  %p1044_p7 = scmp.lt.s32.totalorder %s1042_s30, %s1038_s28 }
  0x2c   : > { %v486_v29 = vmul.f32 %v1297_v22, %v1297_v22  ;;  %v487_v32 = vmul.f32 %v1306_v27, %v1306_v27  ;;  %v1321_v35 = vld [vmem:[%s1225_s5 + $0x30] sm:$0xff]  ;;  %v1332_v40 = vld [vmem:[%s1233_s26 + $0x40] sm:$0xff]  ;;  %v489_v41 = vmul.f32 %v1318_v34, %v1318_v34  ;;  %v1341_v45 = vld [vmem:[%s1233_s26 + $0x48] sm:$0xff] }
  0x2d   : > { %v498_v24 = vadd.f32 %v483_v19, %v482_v18  ;;  %v1324_v36 = vld [vmem:[%s1225_s5 + $0x70] sm:$0xff]  ;;  %v264_v43 = vmul.f32 %v1321_v35, %v1321_v35  ;;  %v490_v47 = vmul.f32 %v1332_v40, %v1332_v40  ;;  %v491_v50 = vmul.f32 %v1341_v45, %v1341_v45  ;;  %v1353_v52 = vld [vmem:[%s1233_s26 + $0x58] sm:$0xff]  ;;  %v254_v58 = vld [vmem:[%s1233_s26 + $0x60] sm:$0xff]  ;;  %p1040_p4 = pnand %p1039_p3, %p1180_p9  ;;  %p1045_p8 = por %p1044_p7, %p1043_p6 }
  0x2e   : > { %v1329_v39 = vld [vmem:[%s1225_s5 + $0x10] sm:$0xff]  ;;  %v272_v44 = vmul.f32 %v1324_v36, %v1324_v36  ;;  %v1356_v53 = vld [vmem:[%s1225_s5 + $0x18] sm:$0xff]  ;;  %v493_v59 = vmul.f32 %v1353_v52, %v1353_v52  ;;  %v255_v63 = vld [vmem:[%s1233_s26 + $0x68] sm:$0xff]  ;;  %v494_v4 = vmul.f32 %v254_v58, %v254_v58 }
  0x2f   : > { %v499_v30 = vadd.f32 %v498_v24, %v484_v20  ;;  %v260_v46 = vmul.f32 %v1329_v39, %v1329_v39  ;;  %v1348_v49 = vld [vmem:[%s1233_s26 + $0x50] sm:$0xff]  ;;  %v1359_v54 = vld [vmem:[%s1225_s5 + $0x58] sm:$0xff]  ;;  %v261_v61 = vmul.f32 %v1356_v53, %v1356_v53  ;;  %p1041_p5 = pneg %p1040_p4 }
  0x30   : > { %v492_v55 = vmul.f32 %v1348_v49, %v1348_v49  ;;  %v1364_v57 = vld [vmem:[%s1225_s5 + $0x78] sm:$0xff]  ;;  %v269_v62 = vmul.f32 %v1359_v54, %v1359_v54 }
  0x31   : > { %300 = vadd.xlane.f32.xlu2 %v271_v9  ;;  %298 = vadd.xlane.f32.xlu0 %v270_v10  ;;  %v500_v33 = vadd.f32 %v499_v30, %v485_v23  ;;  %v273_v3 = vmul.f32 %v1364_v57, %v1364_v57  ;;  %v256_v9 = vld [vmem:[%s1233_s26 + $0x70] sm:$0xff]  ;;  %v495_v10 = vmul.f32 %v255_v63, %v255_v63  ;;  %v257_v18 = vld [vmem:[%s1233_s26 + $0x78] sm:$0xff]  ;;  %p1046_p10 = pnand %p1045_p8, %p1041_p5 }
  0x32   : > { %282 = vadd.xlane.f32.xlu1 %v262_v11  ;;  %v1379_v19 = vld [vmem:[%s1225_s5 + $0x38] sm:$0xff]  ;;  %v496_v20 = vmul.f32 %v256_v9, %v256_v9  ;;  %v497_v24 = vmul.f32 %v257_v18, %v257_v18 }
  0x33   : > { %v501_v38 = vadd.f32 %v500_v33, %v486_v29 }
  0x35   : > { %v502_v42 = vadd.f32 %v501_v38, %v487_v32 }
  0x37   : > { %v503_v48 = vadd.f32 %v502_v42, %v488_v37 }
  0x39   : > { %294 = vadd.xlane.f32.xlu2 %v268_v25  ;;  %276 = vadd.xlane.f32.xlu0 %v259_v26  ;;  %v504_v51 = vadd.f32 %v503_v48, %v489_v41  ;;  %v265_v26 = vmul.f32 %v1379_v19, %v1379_v19 }
  0x3a   : > { %284 = vadd.xlane.f32.xlu1 %v263_v28 }
  0x3b   : > { %v505_v56 = vadd.f32 %v504_v51, %v490_v47 }
  0x3d   : > { %v506_v60 = vadd.f32 %v505_v56, %v491_v50 }
  0x3f   : > { %v507_v5 = vadd.f32 %v506_v60, %v492_v55 }
  0x41   : > { %286 = vadd.xlane.f32.xlu2 %v264_v43  ;;  %302 = vadd.xlane.f32.xlu0 %v272_v44  ;;  %v508_v11 = vadd.f32 %v507_v5, %v493_v59 }
  0x42   : > { %278 = vadd.xlane.f32.xlu1 %v260_v46 }
  0x43   : > { %v509_v23 = vadd.f32 %v508_v11, %v494_v4 }
  0x45   : > { %v510_v25 = vadd.f32 %v509_v23, %v495_v10 }
  0x47   : > { %v511_v28 = vadd.f32 %v510_v25, %v496_v20 }
  0x49   : > { %280 = vadd.xlane.f32.xlu2 %v261_v61  ;;  %296 = vadd.xlane.f32.xlu0 %v269_v62  ;;  %v512_v29 = vadd.f32 %v511_v28, %v497_v24 }
  0x4a   : > { %304 = vadd.xlane.f32.xlu1 %v273_v3 }
  0x4b   : > { %v513_v30 = vrot.slane %v512_v29, 4 }
  0x4d   : > { %v514_v32 = vadd.f32 %v513_v30, %v512_v29 }
  0x4f   : > { %v515_v33 = vrot.slane %v514_v32, 2 }
  0x51   : > { %288 = vadd.xlane.f32.xlu0 %v265_v26  ;;  %v516_v37 = vadd.f32 %v515_v33, %v514_v32 }
  0x53   : > { %v517_v38 = vrot.slane %v516_v37, 1 }
  0x55   : > { %v518_v41 = vadd.f32 %v517_v38, %v516_v37 }
  0x57   : > { %v519_v42 = vadd.f32 1e-12, %v518_v41 }
  0x59   : > { %928 = vrsqrt.f32 %v519_v42  ;;  %vm526_vm0 = vweird.f32 %v519_v42 }
  0x5f   : > { %v929_v43 = vpop.eup %928 }
  0x60   : > { %v521_v44 = vmul.f32 %v929_v43, %v519_v42  ;;  %vm527_vm1 = vweird.f32 %v929_v43 }
  0x61   : > { %vm528_vm2 = vmor %vm526_vm0, %vm527_vm1 }
  0x62   : > { %v522_v46 = vmul.f32 %v929_v43, %v521_v44 }
  0x64   : > { %v523_v47 = vmul.f32 0.5, %v522_v46 }
  0x66   : > { %v524_v48 = vsub.f32 1.5, %v523_v47 }
  0x68   : > { %v525_v50 = vmul.f32 %v929_v43, %v524_v48 }
  0x6a   : > { %v1383_v51 = vsel %vm528_vm2, %v929_v43, %v525_v50 }
  0x6b   : > { %v561_v55 = vmul.f32 %v1383_v51, %v257_v18  ;;  %v560_v56 = vmul.f32 %v1383_v51, %v256_v9  ;;  %v559_v59 = vmul.f32 %v1383_v51, %v255_v63  ;;  %v558_v60 = vmul.f32 %v1383_v51, %v254_v58 }
  0x6c   : > { %v557_v61 = vmul.f32 %v1383_v51, %v1353_v52  ;;  %v556_v58 = vmul.f32 %v1383_v51, %v1348_v49  ;;  %v555_v62 = vmul.f32 %v1383_v51, %v1341_v45  ;;  %v554_v52 = vmul.f32 %v1383_v51, %v1332_v40 }
  0x6d   : > { %562 = vmatpush.msra.mxu0 %v561_v55  ;;  %810 = vmatpush.msra.mxu2 %v561_v55  ;;  %v553_v63 = vmul.f32 %v1383_v51, %v1318_v34  ;;  %v552_v45 = vmul.f32 %v1383_v51, %v1313_v31  ;;  %v551_v40 = vmul.f32 %v1383_v51, %v1306_v27 }
  0x6e   : > { %809 = vmatpush.msra.mxu1 %v561_v55  ;;  %811 = vmatpush.msra.mxu3 %v561_v55  ;;  %v550_v34 = vmul.f32 %v1383_v51, %v1297_v22  ;;  %v549_v31 = vmul.f32 %v1383_v51, %v1285_v17  ;;  %v548_v27 = vmul.f32 %v1383_v51, %v1276_v14 }
  0x6f   : > { %563 = vmatpush.msra.mxu0 %v560_v56  ;;  %813 = vmatpush.msra.mxu2 %v560_v56  ;;  %v547_v22 = vmul.f32 %v1383_v51, %v1273_v13  ;;  %v546_v17 = vmul.f32 %v1383_v51, %v1270_v12 }
  0x70   : > { %812 = vmatpush.msra.mxu1 %v560_v56  ;;  %814 = vmatpush.msra.mxu3 %v560_v56 }
  0x71   : > { %564 = vmatpush.msra.mxu0 %v559_v59  ;;  %816 = vmatpush.msra.mxu2 %v559_v59 }
  0x72   : > { %815 = vmatpush.msra.mxu1 %v559_v59  ;;  %817 = vmatpush.msra.mxu3 %v559_v59 }
  0x73   : > { %565 = vmatpush.msra.mxu0 %v558_v60  ;;  %819 = vmatpush.msra.mxu2 %v558_v60 }
  0x74   : > { %818 = vmatpush.msra.mxu1 %v558_v60  ;;  %820 = vmatpush.msra.mxu3 %v558_v60 }
  0x75   : > { %566 = vmatpush.msra.mxu0 %v557_v61  ;;  %822 = vmatpush.msra.mxu2 %v557_v61 }
  0x76   : > { %821 = vmatpush.msra.mxu1 %v557_v61  ;;  %823 = vmatpush.msra.mxu3 %v557_v61 }
  0x77   : > { %567 = vmatpush.msra.mxu0 %v556_v58  ;;  %825 = vmatpush.msra.mxu2 %v556_v58 }
  0x78   : > { %824 = vmatpush.msra.mxu1 %v556_v58  ;;  %826 = vmatpush.msra.mxu3 %v556_v58 }
  0x79   : > { %568 = vmatpush.msra.mxu0 %v555_v62  ;;  %828 = vmatpush.msra.mxu2 %v555_v62 }
  0x7a   : > { %827 = vmatpush.msra.mxu1 %v555_v62  ;;  %829 = vmatpush.msra.mxu3 %v555_v62 }
  0x7b   : > { %569 = vmatpush.msra.mxu0 %v554_v52  ;;  %831 = vmatpush.msra.mxu2 %v554_v52 }
  0x7c   : > { %830 = vmatpush.msra.mxu1 %v554_v52  ;;  %832 = vmatpush.msra.mxu3 %v554_v52 }
  0x7d   : > { %570 = vmatpush.msra.mxu0 %v553_v63  ;;  %834 = vmatpush.msra.mxu2 %v553_v63 }
  0x7e   : > { %833 = vmatpush.msra.mxu1 %v553_v63  ;;  %835 = vmatpush.msra.mxu3 %v553_v63 }
  0x7f   : > { %571 = vmatpush.msra.mxu0 %v552_v45  ;;  %837 = vmatpush.msra.mxu2 %v552_v45 }
  0x80   : > { %836 = vmatpush.msra.mxu1 %v552_v45  ;;  %838 = vmatpush.msra.mxu3 %v552_v45 }
  0x81   : > { %572 = vmatpush.msra.mxu0 %v551_v40  ;;  %840 = vmatpush.msra.mxu2 %v551_v40 }
  0x82   : > { %839 = vmatpush.msra.mxu1 %v551_v40  ;;  %841 = vmatpush.msra.mxu3 %v551_v40 }
  0x83   : > { %573 = vmatpush.msra.mxu0 %v550_v34  ;;  %843 = vmatpush.msra.mxu2 %v550_v34 }
  0x84   : > { %842 = vmatpush.msra.mxu1 %v550_v34  ;;  %844 = vmatpush.msra.mxu3 %v550_v34 }
  0x85   : > { %574 = vmatpush.msra.mxu0 %v549_v31  ;;  %846 = vmatpush.msra.mxu2 %v549_v31 }
  0x86   : > { %845 = vmatpush.msra.mxu1 %v549_v31  ;;  %847 = vmatpush.msra.mxu3 %v549_v31 }
  0x87   : > { %575 = vmatpush.msra.mxu0 %v548_v27  ;;  %849 = vmatpush.msra.mxu2 %v548_v27 }
  0x88   : > { %848 = vmatpush.msra.mxu1 %v548_v27  ;;  %850 = vmatpush.msra.mxu3 %v548_v27 }
  0x89   : > { %576 = vmatpush.msra.mxu0 %v547_v22  ;;  %852 = vmatpush.msra.mxu2 %v547_v22 }
  0x8a   : > { %851 = vmatpush.msra.mxu1 %v547_v22  ;;  %853 = vmatpush.msra.mxu3 %v547_v22 }
  0x8b   : > { %577 = vmatpush.msra.mxu0 %v546_v17  ;;  %855 = vmatpush.msra.mxu2 %v546_v17 }
  0x8c   : > { %854 = vmatpush.msra.mxu1 %v546_v17  ;;  %856 = vmatpush.msra.mxu3 %v546_v17 }
  0x9c   : > { %v293_v14 = vpop.xlane.xlu2 %292  ;;  %v291_v49 = vpop.xlane.xlu0 %290 }
  0x9d   : > { %v1413_v3 = vadd.f32 1e-12, %v293_v14  ;;  %v314_v4 = vadd.f32 1e-12, %v291_v49  ;;  %v275_v5 = vpop.xlane.xlu1 %274 }
  0x9e   : > { %v306_v13 = vadd.f32 1e-12, %v275_v5 }
  0x9f   : > { %930 = vrsqrt.f32 %v1413_v3  ;;  %vm418_vm3 = vweird.f32 %v1413_v3  ;;  %vm408_vm4 = vweird.f32 %v314_v4 }
  0xa0   : > { %932 = vrsqrt.f32 %v314_v4  ;;  %vm328_vm5 = vweird.f32 %v306_v13 }
  0xa1   : > { %934 = vrsqrt.f32 %v306_v13 }
  0xa4   : > { %v301_v9 = vpop.xlane.xlu2 %300  ;;  %v299_v10 = vpop.xlane.xlu0 %298 }
  0xa5   : > { %v1416_v12 = vpop.eup %930  ;;  %v1418_v11 = vadd.f32 1e-12, %v301_v9  ;;  %v1420_v18 = vadd.f32 1e-12, %v299_v10  ;;  %v283_v20 = vpop.xlane.xlu1 %282 }
  0xa6   : > { %v933_v23 = vpop.eup %932  ;;  %v413_v24 = vmul.f32 %v1416_v12, %v1413_v3  ;;  %v1424_v25 = vadd.f32 1e-12, %v283_v20  ;;  %vm419_vm8 = vweird.f32 %v1416_v12 }
  0xa7   : > { %v935_v26 = vpop.eup %934  ;;  %v403_v28 = vmul.f32 %v933_v23, %v314_v4  ;;  %936 = vrsqrt.f32 %v1418_v11  ;;  %vm409_vm7 = vweird.f32 %v933_v23  ;;  %vm448_vm10 = vweird.f32 %v1420_v18  ;;  %vm1468_vm14 = vmor %vm418_vm3, %vm419_vm8 }
  0xa8   : > { %v414_v29 = vmul.f32 %v1416_v12, %v413_v24  ;;  %v323_v30 = vmul.f32 %v935_v26, %v306_v13  ;;  %938 = vrsqrt.f32 %v1420_v18  ;;  %vm329_vm6 = vweird.f32 %v935_v26  ;;  %vm410_vm12 = vmor %vm408_vm4, %vm409_vm7 }
  0xa9   : > { %v404_v32 = vmul.f32 %v933_v23, %v403_v28  ;;  %940 = vrsqrt.f32 %v1424_v25  ;;  %vm330_vm9 = vmor %vm328_vm5, %vm329_vm6  ;;  %vm368_vm11 = vweird.f32 %v1424_v25  ;;  %vm458_vm15 = vweird.f32 %v1418_v11 }
  0xaa   : > { %v415_v33 = vmul.f32 0.5, %v414_v29  ;;  %v324_v37 = vmul.f32 %v935_v26, %v323_v30 }
  0xab   : > { %v405_v38 = vmul.f32 0.5, %v404_v32 }
  0xac   : > { %v416_v41 = vsub.f32 1.5, %v415_v33  ;;  %v325_v42 = vmul.f32 0.5, %v324_v37  ;;  %v295_v43 = vpop.xlane.xlu2 %294  ;;  %v277_v44 = vpop.xlane.xlu0 %276 }
  0xad   : > { %v1431_v46 = vpop.eup %936  ;;  %v406_v47 = vsub.f32 1.5, %v405_v38  ;;  %v1433_v48 = vadd.f32 1e-12, %v295_v43  ;;  %v1435_v50 = vadd.f32 1e-12, %v277_v44  ;;  %v285_v51 = vpop.xlane.xlu1 %284 }
  0xae   : > { %v1437_v55 = vpop.eup %938  ;;  %v326_v56 = vsub.f32 1.5, %v325_v42  ;;  %v453_v59 = vmul.f32 %v1431_v46, %v1418_v11  ;;  %v1441_v60 = vadd.f32 1e-12, %v285_v51  ;;  %v417_v63 = vmul.f32 %v1416_v12, %v416_v41 }
  0xaf   : > { %v1443_v61 = vpop.eup %940  ;;  %v443_v58 = vmul.f32 %v1437_v55, %v1420_v18  ;;  %942 = vrsqrt.f32 %v1433_v48  ;;  %v407_v34 = vmul.f32 %v933_v23, %v406_v47  ;;  %vm428_vm13 = vweird.f32 %v1433_v48 }
  0xb0   : > { %v454_v62 = vmul.f32 %v1431_v46, %v453_v59  ;;  %v363_v52 = vmul.f32 %v1443_v61, %v1424_v25  ;;  %944 = vrsqrt.f32 %v1435_v50  ;;  %v327_v40 = vmul.f32 %v935_v26, %v326_v56 }
  0xb1   : > { %v444_v45 = vmul.f32 %v1437_v55, %v443_v58  ;;  %946 = vrsqrt.f32 %v1441_v60  ;;  %v411_v14 = vsel %vm410_vm12, %v933_v23, %v407_v34  ;;  %vm369_vm0 = vweird.f32 %v1443_v61 }
  0xb2   : > { %v364_v31 = vmul.f32 %v1443_v61, %v363_v52  ;;  %v455_v27 = vmul.f32 0.5, %v454_v62  ;;  %v331_v17 = vsel %vm330_vm9, %v935_v26, %v327_v40  ;;  %v538_v13 = vmul.f32 %v411_v14, %v1243_v1  ;;  %vm370_vm3 = vmor %vm368_vm11, %vm369_vm0 }
  0xb3   : > { %v445_v22 = vmul.f32 0.5, %v444_v45  ;;  %v530_v5 = vmul.f32 %v331_v17, %v1246_v2  ;;  %v421_v1 = vsel %vm1468_vm14, %v1416_v12, %v417_v63  ;;  %vm338_vm1 = vweird.f32 %v1435_v50 }
  0xb4   : > { %v365_v49 = vmul.f32 0.5, %v364_v31  ;;  %v287_v9 = vpop.xlane.xlu2 %286  ;;  %v303_v10 = vpop.xlane.xlu0 %302  ;;  %602 = vmatmul.f32.vlgmr.msra.gmra.mxu2 %v538_v13  ;;  %v456_v33 = vsub.f32 1.5, %v455_v27  ;;  %vm449_vm2 = vweird.f32 %v1437_v55  ;;  %v539_v41 = vmul.f32 %v421_v1, %v1240_v0 }
  0xb5   : > { %v1472_v20 = vpop.eup %942  ;;  %v446_v23 = vsub.f32 1.5, %v445_v22  ;;  %v1474_v24 = vadd.f32 1e-12, %v287_v9  ;;  %v1476_v26 = vadd.f32 1e-12, %v303_v10  ;;  %v279_v2 = vpop.xlane.xlu1 %278  ;;  %578 = vmatmul.f32.vlgmr.msra.gmra.mxu0 %v530_v5  ;;  %vm450_vm4 = vmor %vm448_vm10, %vm449_vm2  ;;  %vm459_vm7 = vweird.f32 %v1431_v46 }
  0xb6   : > { %v1481_v28 = vpop.eup %944  ;;  %v366_v3 = vsub.f32 1.5, %v365_v49  ;;  %v423_v29 = vmul.f32 %v1472_v20, %v1433_v48  ;;  %v1486_v30 = vadd.f32 1e-12, %v279_v2  ;;  %vm429_vm6 = vweird.f32 %v1472_v20 }
  0xb7   : > { %v1489_v32 = vpop.eup %946  ;;  %v333_v12 = vmul.f32 %v1481_v28, %v1435_v50  ;;  %948 = vrsqrt.f32 %v1474_v24  ;;  %v447_v44 = vmul.f32 %v1437_v55, %v446_v23  ;;  %vm339_vm5 = vweird.f32 %v1481_v28  ;;  %vm1542_vm10 = vmor %vm428_vm13, %vm429_vm6 }
  0xb8   : > { %v424_v37 = vmul.f32 %v1472_v20, %v423_v29  ;;  %v373_v38 = vmul.f32 %v1489_v32, %v1441_v60  ;;  %950 = vrsqrt.f32 %v1476_v26  ;;  %v367_v43 = vmul.f32 %v1443_v61, %v366_v3  ;;  %vm1555_vm12 = vmor %vm338_vm1, %vm339_vm5 }
  0xb9   : > { %v334_v42 = vmul.f32 %v1481_v28, %v333_v12  ;;  %952 = vrsqrt.f32 %v1486_v30  ;;  %v451_v59 = vsel %vm450_vm4, %v1437_v55, %v447_v44  ;;  %v457_v25 = vmul.f32 %v1431_v46, %v456_v33  ;;  %vm1567_vm13 = vmor %vm458_vm15, %vm459_vm7 }
  0xba   : > { %v425_v47 = vmul.f32 0.5, %v424_v37  ;;  %v374_v51 = vmul.f32 %v1489_v32, %v373_v38  ;;  %v371_v56 = vsel %vm370_vm3, %v1443_v61, %v367_v43  ;;  %v542_v63 = vmul.f32 %v451_v59, %v1258_v7 }
  0xbb   : > { %v335_v0 = vmul.f32 0.5, %v334_v42  ;;  %v534_v52 = vmul.f32 %v371_v56, %v1261_v8  ;;  %vm378_vm8 = vweird.f32 %v1441_v60  ;;  %vm379_vm9 = vweird.f32 %v1489_v32 }
  0xbc   : > { %v426_v58 = vsub.f32 1.5, %v425_v47  ;;  %v375_v62 = vmul.f32 0.5, %v374_v51  ;;  %v281_v45 = vpop.xlane.xlu2 %280  ;;  %v297_v18 = vpop.xlane.xlu0 %296  ;;  %605 = vmatmul.f32.gmra.mxu2 %v539_v41  ;;  %614 = vmatmul.f32.vlgmr.msra.gmra.mxu3 %v542_v63  ;;  %vm388_vm11 = vweird.f32 %v1474_v24  ;;  %vm380_vm14 = vmor %vm378_vm8, %vm379_vm9  ;;  %v461_v29 = vsel %vm1567_vm13, %v1431_v46, %v457_v25 }
  0xbd   : > { %v1517_v40 = vpop.eup %948  ;;  %v336_v34 = vsub.f32 1.5, %v335_v0  ;;  %v1519_v31 = vadd.f32 1e-12, %v281_v45  ;;  %v1521_v27 = vadd.f32 1e-12, %v297_v18  ;;  %v305_v61 = vpop.xlane.xlu1 %304  ;;  %590 = vmatmul.f32.vlgmr.msra.gmra.mxu1 %v534_v52  ;;  %v543_v46 = vmul.f32 %v461_v29, %v1255_v6 }
  0xbe   : > { %v1524_v55 = vpop.eup %950  ;;  %v376_v22 = vsub.f32 1.5, %v375_v62  ;;  %v383_v8 = vmul.f32 %v1517_v40, %v1474_v24  ;;  %v1528_v7 = vadd.f32 1e-12, %v305_v61  ;;  %v427_v17 = vmul.f32 %v1472_v20, %v426_v58 }
  0xbf   : > { %v1531_v14 = vpop.eup %952  ;;  %v463_v49 = vmul.f32 %v1524_v55, %v1476_v26  ;;  %954 = vrsqrt.f32 %v1519_v31  ;;  %v337_v4 = vmul.f32 %v1481_v28, %v336_v34  ;;  %vm389_vm0 = vweird.f32 %v1517_v40 }
  0xc0   : > { %v384_v13 = vmul.f32 %v1517_v40, %v383_v8  ;;  %v343_v9 = vmul.f32 %v1531_v14, %v1486_v30  ;;  %956 = vrsqrt.f32 %v1521_v27  ;;  %v377_v23 = vmul.f32 %v1489_v32, %v376_v22  ;;  %vm390_vm2 = vmor %vm388_vm11, %vm389_vm0 }
  0xc1   : > { %v464_v48 = vmul.f32 %v1524_v55, %v463_v49  ;;  %958 = vrsqrt.f32 %v1528_v7  ;;  %v431_v3 = vsel %vm1542_vm10, %v1472_v20, %v427_v17  ;;  %v341_v11 = vsel %vm1555_vm12, %v1481_v28, %v337_v4 }
  0xc2   : > { %v385_v50 = vmul.f32 0.5, %v384_v13  ;;  %v344_v1 = vmul.f32 %v1531_v14, %v343_v9  ;;  %v381_v12 = vsel %vm380_vm14, %v1489_v32, %v377_v23  ;;  %v540_v37 = vmul.f32 %v431_v3, %v1279_v15 }
  0xc3   : > { %v465_v33 = vmul.f32 0.5, %v464_v48  ;;  %v531_v41 = vmul.f32 %v341_v11, %v1282_v16  ;;  %v535_v42 = vmul.f32 %v381_v12, %v1294_v21  ;;  %vm349_vm15 = vweird.f32 %v1531_v14 }
  0xc4   : > { %v386_v38 = vsub.f32 1.5, %v385_v50  ;;  %v345_v60 = vmul.f32 0.5, %v344_v1  ;;  %v289_v20 = vpop.xlane.xlu0 %288  ;;  %vm348_vm1 = vweird.f32 %v1486_v30  ;;  %608 = vmatmul.f32.gmra.mxu2 %v540_v37  ;;  %617 = vmatmul.f32.gmra.mxu3 %v543_v46  ;;  %vm468_vm3 = vweird.f32 %v1476_v26 }
  0xc5   : > { %v1587_v43 = vpop.eup %954  ;;  %v466_v44 = vsub.f32 1.5, %v465_v33  ;;  %v1590_v47 = vadd.f32 1e-12, %v289_v20  ;;  %581 = vmatmul.f32.gmra.mxu0 %v531_v41  ;;  %593 = vmatmul.f32.gmra.mxu1 %v535_v42  ;;  %vm350_vm4 = vmor %vm348_vm1, %vm349_vm15  ;;  %vm469_vm5 = vweird.f32 %v1524_v55  ;;  %vm358_vm7 = vweird.f32 %v1519_v31 }
  0xc6   : > { %v957_v28 = vpop.eup %956  ;;  %v346_v32 = vsub.f32 1.5, %v345_v60  ;;  %v353_v15 = vmul.f32 %v1587_v43, %v1519_v31  ;;  %v387_v16 = vmul.f32 %v1517_v40, %v386_v38  ;;  %vm470_vm6 = vmor %vm468_vm3, %vm469_vm5  ;;  %vm359_vm8 = vweird.f32 %v1587_v43 }
  0xc7   : > { %v959_v21 = vpop.eup %958  ;;  %v433_v6 = vmul.f32 %v957_v28, %v1521_v27  ;;  %960 = vrsqrt.f32 %v1590_v47  ;;  %v467_v51 = vmul.f32 %v1524_v55, %v466_v44  ;;  %vm439_vm9 = vweird.f32 %v957_v28  ;;  %vm360_vm12 = vmor %vm358_vm7, %vm359_vm8 }
  0xc8   : > { %v354_v0 = vmul.f32 %v1587_v43, %v353_v15  ;;  %v473_v56 = vmul.f32 %v959_v21, %v1528_v7  ;;  %v347_v59 = vmul.f32 %v1531_v14, %v346_v32  ;;  %v391_v25 = vsel %vm390_vm2, %v1517_v40, %v387_v16 }
  0xc9   : > { %v434_v30 = vmul.f32 %v957_v28, %v433_v6  ;;  %v536_v52 = vmul.f32 %v391_v25, %v1321_v35  ;;  %v471_v26 = vsel %vm470_vm6, %v1524_v55, %v467_v51  ;;  %vm479_vm10 = vweird.f32 %v959_v21 }
  0xca   : > { %v355_v24 = vmul.f32 0.5, %v354_v0  ;;  %v474_v58 = vmul.f32 %v959_v21, %v473_v56  ;;  %v351_v62 = vsel %vm350_vm4, %v1531_v14, %v347_v59  ;;  %v544_v34 = vmul.f32 %v471_v26, %v1324_v36 }
  0xcb   : > { %v435_v63 = vmul.f32 0.5, %v434_v30  ;;  %v532_v45 = vmul.f32 %v351_v62, %v1329_v39  ;;  %vm438_vm11 = vweird.f32 %v1521_v27  ;;  %vm478_vm13 = vweird.f32 %v1528_v7 }
  0xcc   : > { %v356_v18 = vsub.f32 1.5, %v355_v24  ;;  %v475_v40 = vmul.f32 0.5, %v474_v58  ;;  %620 = vmatmul.f32.gmra.mxu3 %v544_v34  ;;  %vm440_vm14 = vmor %vm438_vm11, %vm439_vm9  ;;  %vm398_vm1 = vweird.f32 %v1590_v47 }
  0xcd   : > { %v961_v61 = vpop.eup %960  ;;  %v436_v22 = vsub.f32 1.5, %v435_v63  ;;  %584 = vmatmul.f32.gmra.mxu0 %v532_v45  ;;  %596 = vmatmul.f32.gmra.mxu1 %v536_v52  ;;  %vm480_vm15 = vmor %vm478_vm13, %vm479_vm10 }
  0xce   : > { %v476_v8 = vsub.f32 1.5, %v475_v40  ;;  %v393_v35 = vmul.f32 %v961_v61, %v1590_v47  ;;  %v357_v17 = vmul.f32 %v1587_v43, %v356_v18  ;;  %vm399_vm0 = vweird.f32 %v961_v61 }
  0xcf   : > { %v437_v36 = vmul.f32 %v957_v28, %v436_v22  ;;  %vm400_vm2 = vmor %vm398_vm1, %vm399_vm0 }
  0xd0   : > { %v394_v39 = vmul.f32 %v961_v61, %v393_v35  ;;  %v361_v55 = vsel %vm360_vm12, %v1587_v43, %v357_v17  ;;  %v477_v14 = vmul.f32 %v959_v21, %v476_v8 }
  0xd1   : > { %v441_v49 = vsel %vm440_vm14, %v957_v28, %v437_v36  ;;  %v533_v13 = vmul.f32 %v361_v55, %v1356_v53 }
  0xd2   : > { %v395_v5 = vmul.f32 0.5, %v394_v39  ;;  %v541_v9 = vmul.f32 %v441_v49, %v1359_v54  ;;  %v481_v27 = vsel %vm480_vm15, %v959_v21, %v477_v14 }
  0xd3   : > { %v545_v31 = vmul.f32 %v481_v27, %v1364_v57 }
  0xd4   : > { %v396_v10 = vsub.f32 1.5, %v395_v5  ;;  %611 = vmatmul.f32.gmra.mxu2 %v541_v9 }
  0xd5   : > { %587 = vmatmul.f32.gmra.mxu0 %v533_v13  ;;  %623 = vmatmul.f32.gmra.mxu3 %v545_v31 }
  0xd6   : > { %v397_v7 = vmul.f32 %v961_v61, %v396_v10 }
  0xd8   : > { %v401_v48 = vsel %vm400_vm2, %v961_v61, %v397_v7 }
  0xd9   : > { %v537_v4 = vmul.f32 %v401_v48, %v1379_v19 }
  0xdb   : > { %599 = vmatmul.f32.gmra.mxu1 %v537_v4 }
 0x132   : > { %v579_v53 = vpop.f32.mrf.mxu0 }
 0x133   : > { %v627_v23 = vmul.f32 0.99999, %v579_v53 }
 0x135   : > { %643 = vst [vmem:[%s1631_s21] sm:$0xff] %v627_v23 }
 0x137   : > { %v603_v54 = vpop.f32.mrf.mxu2 }
 0x138   : > { %v635_v57 = vmul.f32 0.99999, %v603_v54 }
 0x13a   : > { %v591_v2 = vpop.f32.mrf.mxu1  ;;  %651 = vst [vmem:[%s1631_s21 + $0x40] sm:$0xff] %v635_v57 }
 0x13b   : > { %v631_v50 = vmul.f32 0.99999, %v591_v2 }
 0x13d   : > { %647 = vst [vmem:[%s1631_s21 + $0x20] sm:$0xff] %v631_v50 }
 0x13f   : > { %v606_v19 = vpop.f32.mrf.mxu2  ;;  %v615_v3 = vpop.f32.mrf.mxu3 }
 0x140   : > { %v636_v1 = vmul.f32 0.99999, %v606_v19  ;;  %v639_v29 = vmul.f32 0.99999, %v615_v3 }
 0x142   : > { %v582_v33 = vpop.f32.mrf.mxu0  ;;  %v594_v11 = vpop.f32.mrf.mxu1  ;;  %652 = vst [vmem:[%s1631_s21 + $0x48] sm:$0xff] %v636_v1 }
 0x143   : > { %v628_v12 = vmul.f32 0.99999, %v582_v33  ;;  %v632_v37 = vmul.f32 0.99999, %v594_v11  ;;  %655 = vst [vmem:[%s1631_s21 + $0x60] sm:$0xff] %v639_v29 }
 0x145   : > { %644 = vst [vmem:[%s1631_s21 + $0x8] sm:$0xff] %v628_v12 }
 0x146   : > { %648 = vst [vmem:[%s1631_s21 + $0x28] sm:$0xff] %v632_v37 }
 0x147   : > { %v609_v38 = vpop.f32.mrf.mxu2  ;;  %v618_v60 = vpop.f32.mrf.mxu3 }
 0x148   : > { %v637_v41 = vmul.f32 0.99999, %v609_v38  ;;  %v640_v42 = vmul.f32 0.99999, %v618_v60 }
 0x14a   : > { %v585_v20 = vpop.f32.mrf.mxu0  ;;  %v597_v43 = vpop.f32.mrf.mxu1  ;;  %653 = vst [vmem:[%s1631_s21 + $0x50] sm:$0xff] %v637_v41 }
 0x14b   : > { %v629_v44 = vmul.f32 0.99999, %v585_v20  ;;  %v633_v46 = vmul.f32 0.99999, %v597_v43  ;;  %656 = vst [vmem:[%s1631_s21 + $0x68] sm:$0xff] %v640_v42 }
 0x14d   : > { %645 = vst [vmem:[%s1631_s21 + $0x10] sm:$0xff] %v629_v44 }
 0x14e   : > { %649 = vst [vmem:[%s1631_s21 + $0x30] sm:$0xff] %v633_v46 }
 0x14f   : > { %v621_v47 = vpop.f32.mrf.mxu3 }
 0x150   : > { %v641_v28 = vmul.f32 0.99999, %v621_v47 }
 0x152   : > { %v588_v32 = vpop.f32.mrf.mxu0  ;;  %657 = vst [vmem:[%s1631_s21 + $0x70] sm:$0xff] %v641_v28 }
 0x153   : > { %v630_v15 = vmul.f32 0.99999, %v588_v32 }
 0x155   : > { %646 = vst [vmem:[%s1631_s21 + $0x18] sm:$0xff] %v630_v15 }
 0x157   : > { %v612_v16 = vpop.f32.mrf.mxu2 }
 0x158   : > { %v638_v21 = vmul.f32 0.99999, %v612_v16  ;;  %v600_v6 = vpop.f32.mrf.mxu1  ;;  %v624_v0 = vpop.f32.mrf.mxu3 }
 0x159   : > { %v634_v51 = vmul.f32 0.99999, %v600_v6  ;;  %v642_v56 = vmul.f32 0.99999, %v624_v0 }
 0x15a   : > { %654 = vst [vmem:[%s1631_s21 + $0x58] sm:$0xff] %v638_v21 }
 0x15b   : > { %650 = vst [vmem:[%s1631_s21 + $0x38] sm:$0xff] %v634_v51 }
 0x15c   : > { %658 = vst [vmem:[%s1631_s21 + $0x78] sm:$0xff] %v642_v56 }
 0x15d   : > { %1049 = shalt.err (!%p1046_p10)
}
 0x15e   : > { %s1112_s3 = smov 128   ;;  %s1113_s5 = smov 8  }
 0x15f   : > { %861 = dma.vmem_to_hbm [thread:$0]  (%p1180_p9), %s675_s16, 2048, %s677_s18, %s660_s12, %s1112_s3, %s1112_s3, %s1113_s5  }
 0x160 PF: > { %p875_p12 = scmp.ge.s32.totalorder %s1108_s14, 2  ;;  %s691_s25 = sand.u32 1, %s1088_s9  }
 0x161   : > { %s692_s26 = scalar_lea.sflag [#allocation4], %s691_s25 }
 0x162   : > { %p871_p13 = pnand %p875_p12, %p1187_p11 }
 0x164   : > { %p872_p0 = pneg %p871_p13 }
 0x166   : > { %1083 = dma.done.wait (%p872_p0), %s692_s26, 2048  }
 0x167   : > { %1085 = vsyncadd (%p872_p0), %s692_s26, 4294965248  ;;  %s21_s14 = sadd.s32 1, %s1108_s14   ;;  %s1703_s9 = smov %s1092_s10 }
 0x168   : > { %p18_p1 = scmp.ge.s32.totalorder %s21_s14, 5   ;;  %s1704_s10 = smov %s1096_s11 }
 0x169   : > { %s1705_s11 = smov %s1185_s23  ;;  %s1706_s12 = smov %s1104_s13 }
 0x16a   : > { %s1707_s13 = smov %s1709_s17  ;;  %20 = sbr.rel (!%p18_p1) target bundleno = 8 (0x8), region = 86 }
 0x16f   :  { %698 = vsyncpa [#allocation3], 1 }
 0x170   :  { %700 = vsyncpa [#allocation3 + $0x1], 1 }
 0x171   :  { %701 = vsyncpa [#allocation6], 1 }
 0x172   :  { %703 = vsyncpa [#allocation6 + $0x1], 1 }
 0x173   :  { %704 = vsyncpa [#allocation4], 1 }
 0x174   :  { %706 = vsyncpa [#allocation4 + $0x1], 1 }

</bundles_post_ra>
